<compile_context>
chip_gen: v7x
topology: tpu7x:2x2x1
jax: 0.10.0
libtpu: 0.0.40
codegen_flags: <defaults>
</compile_context>

<pallas_src>
import jax
import jax.numpy as jnp
import numpy as np
from jax.experimental import pallas as pl
from jax.experimental.pallas import tpu as pltpu


def _round_up(x, m):
    return ((x + m - 1) // m) * m


_VMEM_LIMIT = 48 * 1024 * 1024  # explicit headroom; under v7x 64 MiB physical


# ----------------------------------------------------------------------------
# Kernel 1: fused cls_score + bbox_pred heads (single combined matmul)
#   out[:, :Cp]        -> scores (+ lane pad)
#   out[:, Cp:Cp+Rp]   -> bbox deltas (+ lane pad)
# ----------------------------------------------------------------------------
def _heads_kernel(x_ref, w_ref, b_ref, o_ref):
    # x: [tn, Dp] bf16, w: [Dp, tc] bf16, b: [1, tc] f32 -> o: [tn, tc] f32
    acc = jnp.dot(x_ref[...], w_ref[...], preferred_element_type=jnp.float32)
    o_ref[...] = (acc + b_ref[...]).astype(o_ref.dtype)


def fused_heads(x_pad, w_comb, b_comb, *, tile_n, tile_c):
    n_pad, d_pad = x_pad.shape
    w_cols = w_comb.shape[1]
    grid = (n_pad // tile_n, w_cols // tile_c)
    return pl.pallas_call(
        _heads_kernel,
        out_shape=jax.ShapeDtypeStruct((n_pad, w_cols), jnp.float32),
        grid_spec=pltpu.PrefetchScalarGridSpec(
            num_scalar_prefetch=0,
            grid=grid,
            in_specs=[
                pl.BlockSpec((tile_n, d_pad), lambda i, j: (i, 0)),
                pl.BlockSpec((d_pad, tile_c), lambda i, j: (0, j)),
                pl.BlockSpec((1, tile_c), lambda i, j: (0, j)),
            ],
            out_specs=pl.BlockSpec((tile_n, tile_c), lambda i, j: (i, j)),
        ),
        compiler_params=pltpu.CompilerParams(
            dimension_semantics=("parallel", "parallel"),
            vmem_limit_bytes=_VMEM_LIMIT,
        ),
    )(x_pad, w_comb, b_comb)


# ----------------------------------------------------------------------------
# Kernel 2: attribute branch (no concat: embedding term precomputed as T rows)
#   attr = softmax(relu(x @ W1a + T[label] + b1) @ W2 + b2)
#   pad lanes of b2 are -1e30 so softmax over the padded width is exact.
# ----------------------------------------------------------------------------
def _attr_kernel(x_ref, t_ref, w1_ref, b1_ref, w2_ref, b2_ref, o_ref):
    h = jnp.dot(x_ref[...], w1_ref[...], preferred_element_type=jnp.float32)
    h = jnp.maximum(h + t_ref[...] + b1_ref[...], 0.0)
    logits = (
        jnp.dot(h.astype(w2_ref.dtype), w2_ref[...],
                preferred_element_type=jnp.float32)
        + b2_ref[...]
    )
    m = jnp.max(logits, axis=-1, keepdims=True)
    e = jnp.exp(logits - m)
    denom = jnp.sum(e, axis=-1, keepdims=True)
    o_ref[...] = (e * pl.reciprocal(denom, approx=True)).astype(o_ref.dtype)


def attr_head(x_pad, t_pad, w1, b1, w2, b2, *, tile_n):
    n_pad, d_pad = x_pad.shape
    hdim = w1.shape[1]
    a_pad = w2.shape[1]
    grid = (n_pad // tile_n,)
    # w1/b1/w2/b2 index maps are grid-invariant -> Pallas skips their re-DMA
    # across row tiles.
    return pl.pallas_call(
        _attr_kernel,
        out_shape=jax.ShapeDtypeStruct((n_pad, a_pad), jnp.float32),
        grid_spec=pltpu.PrefetchScalarGridSpec(
            num_scalar_prefetch=0,
            grid=grid,
            in_specs=[
                pl.BlockSpec((tile_n, d_pad), lambda i: (i, 0)),
                pl.BlockSpec((tile_n, hdim), lambda i: (i, 0)),
                pl.BlockSpec((d_pad, hdim), lambda i: (0, 0)),
                pl.BlockSpec((1, hdim), lambda i: (0, 0)),
                pl.BlockSpec((hdim, a_pad), lambda i: (0, 0)),
                pl.BlockSpec((1, a_pad), lambda i: (0, 0)),
            ],
            out_specs=pl.BlockSpec((tile_n, a_pad), lambda i: (i, 0)),
        ),
        compiler_params=pltpu.CompilerParams(
            dimension_semantics=("parallel",),
            vmem_limit_bytes=_VMEM_LIMIT,
        ),
    )(x_pad, t_pad, w1, b1, w2, b2)


# ----------------------------------------------------------------------------
# Module
# ----------------------------------------------------------------------------
class BUACaffeFastRCNNOutputLayersPallas:
    ATTR_HIDDEN = 512
    EMBED_DIM = 256

    def __init__(self, input_size, num_classes, cls_agnostic_bbox_reg,
                 box_dim=4, attr_on=False, num_attr_classes=401, *, key):
        if not isinstance(input_size, int):
            input_size = int(np.prod(input_size))
        self.input_size = input_size
        self.num_classes = num_classes
        self.attr_on = attr_on
        self.num_attr_classes = num_attr_classes
        num_bbox_reg_classes = 1 if cls_agnostic_bbox_reg else num_classes
        self.reg_dim = num_bbox_reg_classes * box_dim

        d = input_size
        self.d_pad = _round_up(d, 128)
        self.c_pad = _round_up(num_classes, 128)
        self.r_pad = _round_up(self.reg_dim, 128)

        keys = jax.random.split(key, 5)
        hi = jax.lax.Precision.HIGHEST

        # torch-style init (std 0.01 / 0.001, zero biases), stored transposed [in, out]
        cls_w = 0.01 * jax.random.normal(keys[0], (d, num_classes), jnp.float32)
        bbox_w = 0.001 * jax.random.normal(keys[1], (d, self.reg_dim), jnp.float32)
        cls_b = jnp.zeros((num_classes,), jnp.float32)
        bbox_b = jnp.zeros((self.reg_dim,), jnp.float32)

        # ---- combined, lane-padded heads weight: [Dp, Cp + Rp] (bf16) -------
        w_cols = self.c_pad + self.r_pad          # always a multiple of 128
        self.w_cols = w_cols
        self.tile_c = self._pick_tile_c(w_cols)

        heads_w = jnp.zeros((self.d_pad, w_cols), jnp.float32)
        heads_w = heads_w.at[:d, :num_classes].set(cls_w)
        heads_w = heads_w.at[:d, self.c_pad:self.c_pad + self.reg_dim].set(bbox_w)
        self.heads_w = heads_w.astype(jnp.bfloat16)

        heads_b = jnp.zeros((1, w_cols), jnp.float32)
        heads_b = heads_b.at[0, :num_classes].set(cls_b)
        heads_b = heads_b.at[0, self.c_pad:self.c_pad + self.reg_dim].set(bbox_b)
        self.heads_b = heads_b

        if self.attr_on:
            e = self.EMBED_DIM
            hdim = self.ATTR_HIDDEN
            self.a_pad = _round_up(num_attr_classes, 128)

            cls_embed = 0.01 * jax.random.normal(keys[2], (num_classes, e), jnp.float32)
            attr1_w = 0.01 * jax.random.normal(keys[3], (d + e, hdim), jnp.float32)
            attr1_b = jnp.zeros((hdim,), jnp.float32)
            attr2_w = 0.01 * jax.random.normal(
                keys[4], (hdim, num_attr_classes), jnp.float32)
            attr2_b = jnp.zeros((num_attr_classes,), jnp.float32)

            # Split attr_linear1: the x-part goes through the kernel matmul,
            # the embedding-part is folded into a per-class table
            # T[c] = cls_embed[c] @ W1b  (removes the torch concat entirely).
            w1a = jnp.zeros((self.d_pad, hdim), jnp.float32).at[:d].set(attr1_w[:d])
            self.attr1_wa = w1a.astype(jnp.bfloat16)
            self.attr1_b = attr1_b.reshape(1, hdim)
            self.attr_T = jnp.dot(cls_embed, attr1_w[d:], precision=hi)

            w2 = jnp.zeros((hdim, self.a_pad), jnp.float32)
            w2 = w2.at[:, :num_attr_classes].set(attr2_w)
            self.attr2_w = w2.astype(jnp.bfloat16)
            # pad lanes get a huge negative bias -> exp() == 0 in the softmax
            b2 = jnp.full((1, self.a_pad), -1e30, jnp.float32)
            b2 = b2.at[0, :num_attr_classes].set(attr2_b)
            self.attr2_b = b2

    @staticmethod
    def _pick_tile_c(w_cols):
        # Largest 128-multiple divisor of w_cols, capped at 1024 lanes: zero
        # column pad waste, lane-dense stores, a few MB per weight tile.
        if w_cols <= 1024:
            return w_cols
        for cand in (1024, 896, 768, 640, 512, 384, 256, 128):
            if w_cols % cand == 0:
                return cand
        return 128  # unreachable: w_cols is a multiple of 128

    @staticmethod
    def _pick_tile_n(n):
        # multiples of 8 rows; 128-512 rows at realistic proposal counts and
        # >=2 row programs where possible (megacore sharding + pipelining).
        if n >= 1024:
            return 512
        if n >= 512:
            return 256
        if n >= 256:
            return 128
        half = (_round_up(n, 8) // 2 // 8) * 8
        return max(8, half)

    @staticmethod
    def _pad_rows_cols(a, n_pad, c_pad, dtype):
        n, c = a.shape
        out = jnp.zeros((n_pad, c_pad), dtype)
        return out.at[:n, :c].set(a.astype(dtype))

    def __call__(self, x, proposal_boxes=None):
        if x.ndim > 2:
            x = x.reshape(x.shape[0], -1)          # torch.flatten(x, start_dim=1)
        n = x.shape[0]
        tile_n = self._pick_tile_n(n)
        n_pad = _round_up(n, tile_n)

        x_pad = self._pad_rows_cols(x, n_pad, self.d_pad, jnp.bfloat16)

        comb = fused_heads(x_pad, self.heads_w, self.heads_b,
                           tile_n=tile_n, tile_c=self.tile_c)
        scores = comb[:n, :self.num_classes]
        proposal_deltas = comb[:n, self.c_pad:self.c_pad + self.reg_dim]

        if not self.attr_on:
            return scores, proposal_deltas

        # glue (plain JAX): per-row argmax + class-table gather (data dependent)
        all_labels = jnp.argmax(scores, axis=1)
        t_rows = jnp.take(self.attr_T, all_labels, axis=0)      # [n, 512] f32
        t_pad = self._pad_rows_cols(t_rows, n_pad, self.ATTR_HIDDEN, jnp.float32)

        attr_out = attr_head(x_pad, t_pad, self.attr1_wa, self.attr1_b,
                             self.attr2_w, self.attr2_b, tile_n=tile_n)
        attr_score = attr_out[:n, :self.num_attr_classes]
        return scores, proposal_deltas, attr_score


# ----------------------------------------------------------------------------
# Pure-JAX reference (mirrors the bf16 operand rounding of the kernels)
# ----------------------------------------------------------------------------
def _reference(mod, x):
    hi = jax.lax.Precision.HIGHEST
    n = x.shape[0]
    xf = x.reshape(n, -1).astype(jnp.float32)
    xp = jnp.zeros((n, mod.d_pad), jnp.float32).at[:, :mod.input_size].set(xf)
    xb = xp.astype(jnp.bfloat16).astype(jnp.float32)

    comb = jnp.dot(xb, mod.heads_w.astype(jnp.float32), precision=hi) + mod.heads_b
    scores = comb[:, :mod.num_classes]
    deltas = comb[:, mod.c_pad:mod.c_pad + mod.reg_dim]
    if not mod.attr_on:
        return scores, deltas

    labels = jnp.argmax(scores, axis=1)
    t = mod.attr_T[labels]
    h = jnp.dot(xb, mod.attr1_wa.astype(jnp.float32), precision=hi) + t + mod.attr1_b
    h = jnp.maximum(h, 0.0)
    hb = h.astype(jnp.bfloat16).astype(jnp.float32)
    logits = jnp.dot(hb, mod.attr2_w.astype(jnp.float32), precision=hi) + mod.attr2_b
    attr = jax.nn.softmax(logits, axis=-1)[:, :mod.num_attr_classes]
    return scores, deltas, attr


if __name__ == "__main__":
    key = jax.random.PRNGKey(0)
    k_param, k_x = jax.random.split(key)

    # RoI features: N proposals, C=4, H=4, W=2  -> input_size = 32
    N, C, H, W = 16, 4, 4, 2
    num_classes = 16
    x = jax.random.normal(k_x, (N, C, H, W), jnp.float32)

    module = BUACaffeFastRCNNOutputLayersPallas(
        input_size=(C, H, W),
        num_classes=num_classes,
        cls_agnostic_bbox_reg=False,
        box_dim=4,
        attr_on=True,
        num_attr_classes=40,
        key=k_param,
    )

    outs = module(x)
    outs = jax.block_until_ready(outs)

    refs = _reference(module, x)
    for o, r in zip(outs, refs):
        np.testing.assert_allclose(np.asarray(o), np.asarray(r),
                                   rtol=1e-2, atol=1e-4)

    print("KERNEL_OK")
</pallas_src>

<mosaic_0001>
module attributes {stable_mosaic.version = 11 : i64} {
  func.func @_heads_kernel(%arg0: i32, %arg1: i32, %arg2: memref<8x128xbf16, #tpu.memory_space<vmem>>, %arg3: memref<128x256xbf16, #tpu.memory_space<vmem>>, %arg4: memref<1x256xf32, #tpu.memory_space<vmem>>, %arg5: memref<8x256xf32, #tpu.memory_space<vmem>>) attributes {dimension_semantics = [#tpu.dimension_semantics<parallel>, #tpu.dimension_semantics<parallel>], iteration_bounds = array<i64: 2, 1>, scalar_prefetch = 0 : i64, scratch_operands = 0 : i64, tpu.core_type = #tpu.core_type<tc>, window_params = [{transform_indices = @transform_0, window_bounds = array<i64: 8, 128>}, {transform_indices = @transform_1, window_bounds = array<i64: 128, 256>}, {transform_indices = @transform_2, window_bounds = array<i64: 1, 256>}, {transform_indices = @transform_3, window_bounds = array<i64: 8, 256>}]} {
    %c0 = arith.constant 0 : index
    %c0_0 = arith.constant 0 : index
    %0 = vector.load %arg2[%c0, %c0_0] : memref<8x128xbf16, #tpu.memory_space<vmem>>, vector<8x128xbf16>
    %c0_1 = arith.constant 0 : index
    %c0_2 = arith.constant 0 : index
    %1 = vector.load %arg3[%c0_1, %c0_2] : memref<128x256xbf16, #tpu.memory_space<vmem>>, vector<128x256xbf16>
    %cst = arith.constant dense<0.000000e+00> : vector<8x256xf32>
    %2 = tpu.matmul %0, %1, %cst {dimension_numbers = #tpu.dot_dimension_numbers<[1], [0], [0], [1], [0, 0, 1, 1], [], []>} : vector<8x128xbf16>, vector<128x256xbf16>, vector<8x256xf32> -> vector<8x256xf32>
    %c0_3 = arith.constant 0 : index
    %c0_4 = arith.constant 0 : index
    %3 = vector.load %arg4[%c0_3, %c0_4] : memref<1x256xf32, #tpu.memory_space<vmem>>, vector<1x256xf32>
    %4 = vector.broadcast %3 : vector<1x256xf32> to vector<8x256xf32>
    %5 = arith.addf %2, %4 : vector<8x256xf32>
    %c0_5 = arith.constant 0 : index
    %c0_6 = arith.constant 0 : index
    %6 = vector.load %arg5[%c0_5, %c0_6] : memref<8x256xf32, #tpu.memory_space<vmem>>, vector<8x256xf32>
    tpu.vector_store %arg5[%c0_5, %c0_6], %5 {strides = array<i32>} : memref<8x256xf32, #tpu.memory_space<vmem>>, vector<8x256xf32>,
    return
  }
  func.func @transform_0(%arg0: i32, %arg1: i32) -> (i32, i32) {
    %c0_i32 = arith.constant 0 : i32
    %c0_i32_0 = arith.constant 0 : i32
    return %arg0, %c0_i32 : i32, i32
  }
  func.func @transform_1(%arg0: i32, %arg1: i32) -> (i32, i32) {
    %c0_i32 = arith.constant 0 : i32
    %c0_i32_0 = arith.constant 0 : i32
    return %c0_i32, %arg1 : i32, i32
  }
  func.func @transform_2(%arg0: i32, %arg1: i32) -> (i32, i32) {
    %c0_i32 = arith.constant 0 : i32
    %c0_i32_0 = arith.constant 0 : i32
    return %c0_i32, %arg1 : i32, i32
  }
  func.func @transform_3(%arg0: i32, %arg1: i32) -> (i32, i32) {
    %c0_i32 = arith.constant 0 : i32
    return %arg0, %arg1 : i32, i32
  }
}

</mosaic_0001>

<bundles_post_ra>
// kernel: tpu_custom_call.1
= control target key start
LH: loop header
LB: loop body
LE: loop exit
PB: predicated region body
PF: predicated region fallthrough
CT: control target
= control target key end

     0   :  { %8 = vsyncpa [#allocation3], 0  ;;  %s1046_s0 = inlined_call_operand.hbm [shape: bf16[16,128], index: 0, kind: input, shape index: {}]   ;;  %s1047_s1 = inlined_call_operand.hbm [shape: bf16[128,256], index: 1, kind: input, shape index: {}]   ;;  %s1048_s2 = inlined_call_operand.vmem [shape: f32[1,256], index: 2, kind: input, shape index: {}]   ;;  %s1049_s3 = inlined_call_operand.hbm [shape: f32[16,256], index: 3, kind: output, shape index: {}]  }
   0x1   :  { %10 = vsyncpa [#allocation3 + $0x1], 0 }
   0x2   :  { %11 = vsyncpa [#allocation6], 0 }
   0x3   :  { %12 = vsyncpa [#allocation4], 0 }
   0x4   :  { %14 = vsyncpa [#allocation4 + $0x1], 0  ;;  %s825_s12 = smov 0   ;;  %s827_s13 = smov 0  }
   0x5   :  { %s829_s14 = smov 0   ;;  %s831_s15 = smov 0  }
   0x6   :  { %s833_s16 = smov 0   ;;  %s835_s17 = smov 0  }
   0x7 LB: > { %s519_s18 = sadd.s32 4294967295, %s797_s17   ;;  %s520_s19 = sadd.s32 4294967294, %s797_s17   ;;  %s797_s17 = sphi %s835_s17, %s20_s17   ;;  %s793_s16 = sphi %s833_s16, %s1073_s16   ;;  %s789_s15 = sphi %s831_s15, %s1072_s15   ;;  %s785_s14 = sphi %s829_s14, %s1071_s14   ;;  %s781_s13 = sphi %s827_s13, %s1070_s13   ;;  %s777_s12 = sphi %s825_s12, %s1069_s12  }
   0x8   : > { %p52_p0 = scmp.ne.s32.totalorder %s781_s13, %s777_s12  ;;  %p859_p1 = scmp.eq.s32.totalorder %s519_s18, 0 }
   0x9   : > { %p863_p2 = scmp.eq.s32.totalorder %s519_s18, 1  ;;  %p136_p3 = scmp.eq.s32.totalorder %s520_s19, 1 }
   0xa   : > { %s1054_s20 = scalar_select %p859_p1, 1, 0 }
   0xb   : > { %s1055_s21 = scalar_select %p863_p2, 1, 0 }
   0xc   : > { %p869_p4 = por %p859_p1, %p52_p0  ;;  %p521_p5 = scmp.ge.s32.totalorder %s797_s17, 1 }
   0xd   : > { %p874_p6 = por %p136_p3, %p52_p0  ;;  %p143_p7 = scmp.lt.s32.totalorder %s797_s17, 3 }
   0xe   : > { %s1056_s22 = scalar_select %p869_p4, 1, 0 }
   0xf   : > { %s1057_s23 = scalar_select %p874_p6, 1, 0 }
  0x10   : > { %p879_p8 = pnand %p521_p5, %p143_p7  ;;  %s799_s25 = smov [#allocation5]  }
  0x11   : > { %s158_s26 = sshll.u32 %s799_s25, 4  ;;  %s32_s28 = sadd.s32 1, %s793_s16  ;;  %s159_s26 = int_to_ptr.vmem [resolvable:$true] %s158_s26 }
  0x12   : > { %s1058_s24 = scalar_select %p879_p8, 1, 0 }
  0x13   : > { %p561_p9 = pneg %p879_p8  ;;  %s653_s4 = scalar_lea.hbm %s1047_s1, 2048 }
  0x14   : > { %p654_p12 = scmp.ne.s32.totalorder %s1047_s1, %s653_s4  ;;  %p660_p5 = scmp.lt.u32.totalorder %s653_s4, %s1047_s1 }
  0x15   : > { %p888_p11 = pnand %p561_p9, %p859_p1 }
  0x17   : > { %p655_p13 = pneg %p888_p11 }
  0x19   : > { %p656_p0 = pnand %p655_p13, %p654_p12 }
  0x1b   : > { %p657_p3 = pneg %p656_p0 }
  0x1d   : > { %p662_p7 = pnand %p660_p5, %p657_p3 }
  0x1f   : > { %665 = shalt.err (!%p662_p7)
}
  0x20   : > { %s666_s9 = scalar_lea.vmem %s159_s26, 2048  ;;  %p674_p1 = scmp.lt.s32.totalorder %s159_s26, %s159_s26 }
  0x21   : > { %p667_p9 = scmp.ne.s32.totalorder %s159_s26, %s666_s9  ;;  %p675_p4 = scmp.lt.s32.totalorder %s666_s9, %s666_s9 }
  0x23   : > { %p669_p10 = pnand %p667_p9, %p655_p13  ;;  %p676_p8 = por %p675_p4, %p674_p1 }
  0x25   : > { %p670_p6 = pneg %p669_p10 }
  0x27   : > { %p677_p2 = pnand %p676_p8, %p670_p6 }
  0x29   : > { %680 = shalt.err (!%p677_p2)
}
  0x2a   : > { %s800_s10 = smov 128   ;;  %s801_s11 = smov 8  }
  0x2b   : > { %564 = dma.hbm_to_vmem [thread:$0]  (!%p888_p11), %s1047_s1, 2048, %s159_s26, [#allocation6], %s800_s10, %s800_s10, %s801_s11  }
  0x2c   : > { %p34_p1 = scmp.ge.s32.totalorder %s32_s28, 2  ;;  %s39_s25 = sadd.s32 1, %s785_s14 }
  0x2d   : > { %p46_p2 = scmp.ne.s32.totalorder %s785_s14, %s781_s13  ;;  %p47_p4 = scmp.eq.s32.totalorder %s797_s17, 0 }
  0x2e   : > { %s1075_s28 = smov (%p34_p1, %s32_s28), 0  ;;  %p1061_p8 = scmp.ne.s32.totalorder %s1055_s21, 0 }
  0x2f   : > { %p915_p6 = por %p47_p4, %p46_p2  ;;  %s36_s27 = ssub.s32 %s793_s16, %s1075_s28 }
  0x30   : > { %p921_p10 = por %p1061_p8, %p46_p2  ;;  %p574_p12 = scmp.lt.s32.totalorder %s797_s17, 2 }
  0x31   : > { %p37_p11 = scmp.eq.s32.totalorder %s36_s27, 0  ;;  %s180_s26 = sand.u32 1, %s785_s14  }
  0x32   : > { %s525_s4 = sshll.u32 %s180_s26, 2  ;;  %s526_s6 = sshll.u32 %s793_s16, 6 }
  0x33   : > { %s930_s5 = scalar_select %p37_p11, %s785_s14, %s39_s25  }
  0x34   : > { %s936_s9 = scalar_lea.hbm %s1046_s0, %s526_s6  ;;  %s184_s21 = scalar_lea.vmem [#allocation2], %s525_s4 }
  0x35   : > { %s191_s10 = sshll.u32 %s184_s21, 4  ;;  %p942_p13 = pnand %p574_p12, %p915_p6  ;;  %s938_s10 = int_to_ptr.vmem [resolvable:$true] %s191_s10 }
  0x36   : > { %s181_s18 = scalar_lea.sflag [#allocation3], %s180_s26  ;;  %s681_s19 = scalar_lea.hbm %s936_s9, 64 }
  0x37   : > { %p682_p0 = scmp.ne.s32.totalorder %s936_s9, %s681_s19  ;;  %p683_p3 = pneg %p942_p13 }
  0x38   : > { %s686_s4 = scalar_lea.hbm %s1046_s0, 128  ;;  %p687_p9 = scmp.lt.u32.totalorder %s936_s9, %s1046_s0 }
  0x39   : > { %p684_p5 = pnand %p683_p3, %p682_p0  ;;  %p688_p1 = scmp.lt.u32.totalorder %s686_s4, %s681_s19 }
  0x3a   : > { %p690_p4 = scmp.lt.u32.totalorder %s681_s19, %s936_s9 }
  0x3b   : > { %p685_p7 = pneg %p684_p5  ;;  %p689_p2 = por %p688_p1, %p687_p9 }
  0x3d   : > { %p691_p6 = por %p690_p4, %p689_p2 }
  0x3f   : > { %p692_p8 = pnand %p691_p6, %p685_p7 }
  0x41   : > { %695 = shalt.err (!%p692_p8)
}
  0x42   : > { %s696_s26 = scalar_lea.vmem %s938_s10, 64  ;;  %s802_s7 = smov [#allocation2]  }
  0x43   : > { %p697_p12 = scmp.ne.s32.totalorder %s938_s10, %s696_s26  ;;  %s701_s8 = sshll.u32 %s802_s7, 4  ;;  %s702_s8 = int_to_ptr.vmem [resolvable:$false] %s701_s8 }
  0x44   : > { %s703_s21 = scalar_lea.vmem %s702_s8, 128  ;;  %p704_p5 = scmp.lt.s32.totalorder %s938_s10, %s702_s8 }
  0x45   : > { %p699_p11 = pnand %p697_p12, %p683_p3  ;;  %p705_p9 = scmp.lt.s32.totalorder %s703_s21, %s696_s26 }
  0x47   : > { %p700_p0 = pneg %p699_p11  ;;  %p706_p1 = por %p705_p9, %p704_p5 }
  0x49   : > { %p707_p2 = pnand %p706_p1, %p700_p0 }
  0x4b   : > { %710 = shalt.err (!%p707_p2)
}
  0x4c   : > { %568 = dma.hbm_to_vmem [thread:$0]  (!%p942_p13), %s936_s9, 64, %s938_s10, %s181_s18  }
  0x4d   : > { %p1064_p7 = scmp.ne.s32.totalorder %s1058_s24, 0 }
  0x4e   : > { %s974_s19 = sand.u32 (!%p1064_p7), 1, %s781_s13   ;;  %p1065_p3 = scmp.ne.s32.totalorder (!%p1064_p7), %s1056_s22, 0 }
  0x4f   : > { %200 = sbr.rel (%p1064_p7) target bundleno = 352 (0x160), region = 32  ;;  %s528_s25 = sshll.u32 (!%p1064_p7), %s974_s19, 2 }
  0x50   : > { %s203_s27 = scalar_lea.sflag (!%p1064_p7), [#allocation3], %s974_s19  ;;  %s978_s4 = scalar_lea.vmem (!%p1064_p7), [#allocation2], %s528_s25 }
  0x56   : > { %764 = dma.done.wait (%p1065_p3), %s203_s27, 64  }
  0x57   : > { %766 = vsyncadd (%p1065_p3), %s203_s27, 4294967232  ;;  %p1066_p13 = scmp.ne.s32.totalorder %s1054_s20, 0 }
  0x59   : > { %768 = dma.done.wait (%p1066_p13), [#allocation6], 2048  }
  0x5a   : > { %770 = vsyncadd (%p1066_p13), [#allocation6], 4294965248  ;;  %v803_v0 = vmov 0   ;;  %v629_v1 = vld [vmem:[#allocation5 + $0x4] ss:$8 sps:$4 sm:$0xff]   ;;  %v264_v18 = vlaneseq  ;;  %s530_s20 = sshll.u32 %s974_s19, 4 }
  0x5b   : > { %386 = vmatprep.mubr.bf16.mxu0 %v803_v0  ;;  %v631_v2 = vld [vmem:[#allocation5] ss:$8 sps:$4 sm:$0xff]   ;;  %354 = vmatprep.subr.bf16.mxu0 %v629_v1  ;;  %v632_v3 = vld [vmem:[#allocation5 + $0x14] ss:$8 sps:$4 sm:$0xff]   ;;  %v634_v4 = vld [vmem:[#allocation5 + $0x10] ss:$8 sps:$4 sm:$0xff]  }
  0x5c   : > { %355 = vmatpush1.bf16.msra.mxu0 %v631_v2  ;;  %v635_v5 = vld [vmem:[#allocation5 + $0x24] ss:$8 sps:$4 sm:$0xff]   ;;  %v637_v6 = vld [vmem:[#allocation5 + $0x20] ss:$8 sps:$4 sm:$0xff]   ;;  %v638_v7 = vld [vmem:[#allocation5 + $0x34] ss:$8 sps:$4 sm:$0xff]  }
  0x5d   : > { %356 = vmatprep.subr.bf16.mxu0 %v632_v3  ;;  %v640_v8 = vld [vmem:[#allocation5 + $0x30] ss:$8 sps:$4 sm:$0xff]   ;;  %v641_v9 = vld [vmem:[#allocation5 + $0x44] ss:$8 sps:$4 sm:$0xff]   ;;  %v643_v10 = vld [vmem:[#allocation5 + $0x40] ss:$8 sps:$4 sm:$0xff]  }
  0x5e   : > { %v644_v11 = vld [vmem:[#allocation5 + $0x54] ss:$8 sps:$4 sm:$0xff]   ;;  %v646_v12 = vld [vmem:[#allocation5 + $0x50] ss:$8 sps:$4 sm:$0xff]   ;;  %v647_v13 = vld [vmem:[#allocation5 + $0x64] ss:$8 sps:$4 sm:$0xff]  }
  0x5f   : > { %v649_v14 = vld [vmem:[#allocation5 + $0x60] ss:$8 sps:$4 sm:$0xff]   ;;  %v650_v15 = vld [vmem:[#allocation5 + $0x74] ss:$8 sps:$4 sm:$0xff]   ;;  %v652_v16 = vld [vmem:[#allocation5 + $0x70] ss:$8 sps:$4 sm:$0xff]  }
  0x60   : > { %357 = vmatpush1.bf16.msra.mxu0 %v634_v4  ;;  %v245_v17 = vld [vmem:[%s978_s4] sm:$0xf]  ;;  %v265_v19 = vshrl.u32 %v264_v18, 7  ;;  %s552_s9 = sshll.u32 %s789_s15, 8  ;;  %s236_s10 = scalar_lea.vmem [#allocation7], %s530_s20 }
  0x61   : > { %358 = vmatprep.subr.bf16.mxu0 %v635_v5  ;;  %v262_v21 = vld [vmem:[%s1048_s2] sm:$0x3]  ;;  %s414_s11 = sshll.u32 %s236_s10, 4  ;;  %s997_s6 = scalar_lea.hbm %s1049_s3, %s552_s9  ;;  %s999_s11 = int_to_ptr.vmem [resolvable:$true] %s414_s11 }
  0x62   : > { %v266_v20 = vsub.s32 0, %v265_v19  ;;  %v270_v22 = vsub.s32 1, %v265_v19  ;;  %s398_s15 = scalar_lea.sflag [#allocation4], %s974_s19  ;;  %s711_s26 = scalar_lea.vmem %s999_s11, 256 }
  0x63   : > { %p712_p4 = scmp.ne.s32.totalorder %s999_s11, %s711_s26  ;;  %s804_s7 = smov [#allocation7]  }
  0x64   : > { %359 = vmatpush1.bf16.msra.mxu0 %v637_v6  ;;  %v267_v23 = vrot.slane %v262_v21, %v266_v20  ;;  %v271_v24 = vrot.slane %v262_v21, %v270_v22  ;;  %s715_s8 = sshll.u32 %s804_s7, 4  ;;  %s716_s8 = int_to_ptr.vmem [resolvable:$false] %s715_s8 }
  0x65   : > { %360 = vmatprep.subr.bf16.mxu0 %v638_v7  ;;  %p713_p6 = pnand %p712_p4, %p921_p10  ;;  %s717_s21 = scalar_lea.vmem %s716_s8, 512 }
  0x66   : > { %p718_p12 = scmp.lt.s32.totalorder %s999_s11, %s716_s8  ;;  %p719_p11 = scmp.lt.s32.totalorder %s717_s21, %s711_s26 }
  0x67   : > { %p714_p8 = pneg %p713_p6 }
  0x68   : > { %361 = vmatpush1.bf16.msra.mxu0 %v640_v8  ;;  %p720_p0 = por %p719_p11, %p718_p12 }
  0x69   : > { %362 = vmatprep.subr.bf16.mxu0 %v641_v9 }
  0x6a   : > { %p721_p5 = pnand %p720_p0, %p714_p8 }
  0x6c   : > { %363 = vmatpush1.bf16.msra.mxu0 %v643_v10 }
  0x6d   : > { %364 = vmatprep.subr.bf16.mxu0 %v644_v11 }
  0x70   : > { %365 = vmatpush1.bf16.msra.mxu0 %v646_v12 }
  0x71   : > { %366 = vmatprep.subr.bf16.mxu0 %v647_v13 }
  0x74   : > { %367 = vmatpush1.bf16.msra.mxu0 %v649_v14 }
  0x75   : > { %368 = vmatprep.subr.bf16.mxu0 %v650_v15 }
  0x78   : > { %369 = vmatpush1.bf16.msra.mxu0 %v652_v16 }
  0x7b   : > { %387 = vmatmul.mubr.bf16.vlgmr.msra.gmra.mrb[0].mxu0 %v245_v17 }
 0x14e   : > { %v388_v25 = vpop.f32.mrb[0].mxu0 }
 0x14f   : > { %v389_v26 = vadd.f32 %v388_v25, %v267_v23  ;;  %v390_v27 = vpop.f32.mrb[1].mxu0 }
 0x150   : > { %v391_v28 = vadd.f32 %v390_v27, %v271_v24  ;;  %v392_v29 = vpop.f32.mrb[2].mxu0 }
 0x151   : > { %395 = vst [vmem:[%s236_s10] sm:$0xff] %v389_v26  ;;  %v393_v30 = vpop.f32.mrb[3].mxu0 }
 0x152   : > { %396 = vst [vmem:[%s236_s10 + $0x8] sm:$0xff] %v391_v28 }
 0x153   : > { %724 = shalt.err (!%p721_p5)
}
 0x154   : > { %s725_s19 = scalar_lea.hbm %s997_s6, 256  ;;  %s729_s4 = scalar_lea.hbm %s1049_s3, 512 }
 0x155   : > { %p726_p9 = scmp.ne.s32.totalorder %s997_s6, %s725_s19  ;;  %p730_p7 = scmp.lt.u32.totalorder %s997_s6, %s1049_s3 }
 0x156   : > { %p731_p3 = scmp.lt.u32.totalorder %s729_s4, %s725_s19  ;;  %p733_p4 = scmp.lt.u32.totalorder %s725_s19, %s997_s6 }
 0x157   : > { %p727_p1 = pnand %p726_p9, %p921_p10 }
 0x158   : > { %p732_p13 = por %p731_p3, %p730_p7 }
 0x159   : > { %p728_p2 = pneg %p727_p1 }
 0x15a   : > { %p734_p6 = por %p733_p4, %p732_p13 }
 0x15c   : > { %p735_p8 = pnand %p734_p6, %p728_p2 }
 0x15e   : > { %738 = shalt.err (!%p735_p8)
}
 0x15f   : > { %559 = dma.vmem_to_hbm [thread:$0]  (%p921_p10), %s999_s11, 256, %s997_s6, %s398_s15  }
 0x160 PF: > { %s426_s24 = sand.u32 1, %s777_s12   ;;  %p1067_p12 = scmp.ne.s32.totalorder %s1057_s23, 0 }
 0x161   : > { %p1068_p11 = scmp.ge.s32.totalorder %s797_s17, 2  ;;  %s427_s9 = scalar_lea.sflag [#allocation4], %s426_s24 }
 0x163   : > { %p570_p0 = pnand %p1068_p11, %p1067_p12 }
 0x165   : > { %772 = dma.done.wait (!%p570_p0), %s427_s9, 256  }
 0x166   : > { %774 = vsyncadd (!%p570_p0), %s427_s9, 4294967040  ;;  %s20_s17 = sadd.s32 1, %s797_s17   ;;  %s1069_s12 = smov %s781_s13 }
 0x167   : > { %p17_p5 = scmp.ge.s32.totalorder %s20_s17, 4   ;;  %s1070_s13 = smov %s785_s14 }
 0x168   : > { %s1071_s14 = smov %s930_s5  ;;  %s1072_s15 = smov %s793_s16 }
 0x169   : > { %s1073_s16 = smov %s1075_s28  ;;  %19 = sbr.rel (!%p17_p5) target bundleno = 7 (0x7), region = 85 }
 0x170   :  { %432 = vsyncpa [#allocation3], 1 }
 0x171   :  { %434 = vsyncpa [#allocation3 + $0x1], 1 }
 0x172   :  { %435 = vsyncpa [#allocation6], 1 }
 0x173   :  { %436 = vsyncpa [#allocation4], 1 }
 0x174   :  { %438 = vsyncpa [#allocation4 + $0x1], 1 }

</bundles_post_ra>
